<compile_context>
chip_gen: v7x
topology: tpu7x:2x2x1
jax: 0.10.0
libtpu: 0.0.40
codegen_flags: <defaults>
</compile_context>

<pallas_src>
import functools

import jax
import jax.numpy as jnp
from jax.experimental import pallas as pl
from jax.experimental.pallas import tpu as pltpu

_LANE = 128            # lane width: pad last dims to multiples of this (dense vst)
_SUB = 8               # sublane width: batch tiles are multiples of this
_MAX_TB = 512          # upper bound on batch tile (measured pipelining sweet spot)
_NEG = -1e30           # "-inf" bias for padded class columns (exp -> 0)
_VMEM_BUDGET = 48 << 20  # leave headroom below the 64 MiB scoped limit


def _round_up(n, m):
    return ((n + m - 1) // m) * m


def _pad2(a, rows, cols, fill=0.0):
    r, c = a.shape
    if r == rows and c == cols:
        return a
    return jnp.pad(a, ((0, rows - r), (0, cols - c)), constant_values=fill)


def _batch_tile(batch, in_cols, out_cols, resident_bytes):
    """Pick a batch tile: multiple of 8, <=512, and fits VMEM with the
    resident weights + double-buffered x/out tiles."""
    bp = _round_up(batch, _SUB)
    tb = min(_MAX_TB, bp)
    # per-row cost: bf16 input tile (x2 buffers) + f32 output tile (x2 buffers)
    per_row = 2 * (in_cols * 2) + 2 * (out_cols * 4)
    avail = max(_VMEM_BUDGET - resident_bytes, 0)
    while tb > _SUB and tb * per_row > avail:
        tb //= 2
    tb = max(_SUB, _round_up(tb, _SUB))
    bp = _round_up(bp, tb)
    return bp, tb


# ---------------------------------------------------------------------------
# Kernels (matmul operands bf16, biases f32; accumulate & softmax in f32)
# ---------------------------------------------------------------------------
def _fused_mlp_softmax_kernel(x_ref, w1_ref, b1_ref, w2_ref, b2_ref, o_ref):
    """softmax(ReLU(x @ W1 + b1) @ W2 + b2) over the class axis."""
    h = jnp.dot(x_ref[...], w1_ref[...], preferred_element_type=jnp.float32)
    h = jnp.maximum(h + b1_ref[...], 0.0)
    logits = jnp.dot(h.astype(jnp.bfloat16), w2_ref[...],
                     preferred_element_type=jnp.float32) + b2_ref[...]
    m = jnp.max(logits, axis=-1, keepdims=True)
    e = jnp.exp(logits - m)
    denom = jnp.sum(e, axis=-1, keepdims=True)
    o_ref[...] = (e * pl.reciprocal(denom, approx=True)).astype(o_ref.dtype)


def _backbone_kernel(x_ref, w1_ref, b1_ref, o_ref):
    """features = ReLU(x @ W1 + b1)."""
    h = jnp.dot(x_ref[...], w1_ref[...], preferred_element_type=jnp.float32)
    o_ref[...] = jnp.maximum(h + b1_ref[...], 0.0).astype(o_ref.dtype)


def _head_softmax_kernel(f_ref, w2_ref, b2_ref, o_ref):
    """softmax(features @ W2 + b2) over the class axis."""
    logits = jnp.dot(f_ref[...], w2_ref[...],
                     preferred_element_type=jnp.float32) + b2_ref[...]
    m = jnp.max(logits, axis=-1, keepdims=True)
    e = jnp.exp(logits - m)
    denom = jnp.sum(e, axis=-1, keepdims=True)
    o_ref[...] = (e * pl.reciprocal(denom, approx=True)).astype(o_ref.dtype)


# ---------------------------------------------------------------------------
# Wrapper
# ---------------------------------------------------------------------------
@functools.partial(jax.jit, static_argnames=("forward_pass",))
def mlp_head_model(x, params, forward_pass="default"):
    w1, b1, w2, b2 = params["w1"], params["b1"], params["w2"], params["b2"]
    in_dim, hidden = w1.shape
    num_classes = w2.shape[1]

    in_dim_p = _round_up(in_dim, _LANE)
    hidden_p = _round_up(hidden, _LANE)
    classes_p = _round_up(num_classes, _LANE)
    batch = x.shape[0]

    # Lane-dense, bf16 MXU operands; biases stay f32.
    w1_p = _pad2(w1, in_dim_p, hidden_p).astype(jnp.bfloat16)
    b1_p = _pad2(b1, 1, hidden_p)
    w2_p = _pad2(w2, hidden_p, classes_p).astype(jnp.bfloat16)
    b2_p = _pad2(b2, 1, classes_p, fill=_NEG)  # padded classes -> exp()==0

    cparams = pltpu.CompilerParams(
        dimension_semantics=("parallel",),  # shard batch tiles across TCs on v7x
        vmem_limit_bytes=64 << 20,
    )

    def resident(shape):
        return pl.BlockSpec(shape, lambda i: (0, 0))

    def tiled(tb, cols):
        return pl.BlockSpec((tb, cols), lambda i: (i, 0))

    if forward_pass == "default":
        resident_bytes = (in_dim_p * hidden_p * 2 + hidden_p * classes_p * 2
                          + hidden_p * 4 + classes_p * 4)
        batch_p, tb = _batch_tile(batch, in_dim_p, classes_p, resident_bytes)
        x_p = _pad2(x, batch_p, in_dim_p).astype(jnp.bfloat16)
        out = pl.pallas_call(
            _fused_mlp_softmax_kernel,
            out_shape=jax.ShapeDtypeStruct((batch_p, classes_p), jnp.float32),
            grid=(batch_p // tb,),
            in_specs=[
                tiled(tb, in_dim_p),
                resident((in_dim_p, hidden_p)),
                resident((1, hidden_p)),
                resident((hidden_p, classes_p)),
                resident((1, classes_p)),
            ],
            out_specs=tiled(tb, classes_p),
            compiler_params=cparams,
        )(x_p, w1_p, b1_p, w2_p, b2_p)
        return out[:batch, :num_classes]

    elif forward_pass == "features":
        resident_bytes = in_dim_p * hidden_p * 2 + hidden_p * 4
        batch_p, tb = _batch_tile(batch, in_dim_p, hidden_p, resident_bytes)
        x_p = _pad2(x, batch_p, in_dim_p).astype(jnp.bfloat16)
        out = pl.pallas_call(
            _backbone_kernel,
            out_shape=jax.ShapeDtypeStruct((batch_p, hidden_p), jnp.float32),
            grid=(batch_p // tb,),
            in_specs=[
                tiled(tb, in_dim_p),
                resident((in_dim_p, hidden_p)),
                resident((1, hidden_p)),
            ],
            out_specs=tiled(tb, hidden_p),
            compiler_params=cparams,
        )(x_p, w1_p, b1_p)
        return out[:batch, :hidden]

    elif forward_pass == "head":
        # `x` is already the (batch, hidden) feature tensor.
        resident_bytes = hidden_p * classes_p * 2 + classes_p * 4
        batch_p, tb = _batch_tile(batch, hidden_p, classes_p, resident_bytes)
        f_p = _pad2(x, batch_p, hidden_p).astype(jnp.bfloat16)
        out = pl.pallas_call(
            _head_softmax_kernel,
            out_shape=jax.ShapeDtypeStruct((batch_p, classes_p), jnp.float32),
            grid=(batch_p // tb,),
            in_specs=[
                tiled(tb, hidden_p),
                resident((hidden_p, classes_p)),
                resident((1, classes_p)),
            ],
            out_specs=tiled(tb, classes_p),
            compiler_params=cparams,
        )(f_p, w2_p, b2_p)
        return out[:batch, :num_classes]

    else:
        raise ValueError("invalid forward pass")


def init_params(key, in_dim, hidden, num_classes):
    k1, k2 = jax.random.split(key)
    lim1 = 1.0 / jnp.sqrt(in_dim)
    lim2 = 1.0 / jnp.sqrt(hidden)
    w1 = jax.random.uniform(k1, (in_dim, hidden), jnp.float32, -lim1, lim1)
    b1 = jnp.zeros((1, hidden), jnp.float32)
    w2 = jax.random.uniform(k2, (hidden, num_classes), jnp.float32, -lim2, lim2)
    b2 = jnp.zeros((1, num_classes), jnp.float32)
    return {"w1": w1, "b1": b1, "w2": w2, "b2": b2}


# ---------------------------------------------------------------------------
# Main
# ---------------------------------------------------------------------------
if __name__ == "__main__":
    key = jax.random.PRNGKey(0)
    kx, kp = jax.random.split(key)

    batch, in_dim, hidden, num_classes = 8, 32, 64, 16
    x = jax.random.normal(kx, (batch, in_dim), jnp.float32)
    params = init_params(kp, in_dim, hidden, num_classes)

    # Preferred path: single fused kernel (no HBM round-trip of features).
    probs = jax.block_until_ready(mlp_head_model(x, params, forward_pass="default"))

    # 'features' + 'head' also exposed to match the module API; this pair
    # round-trips the feature tensor through HBM — use 'default' when possible.
    feats = jax.block_until_ready(mlp_head_model(x, params, forward_pass="features"))
    probs2 = jax.block_until_ready(mlp_head_model(feats, params, forward_pass="head"))

    # Self-check vs plain-JAX reference (reference applies the same bf16
    # operand rounding the MXU sees; tolerances cover approx reciprocal).
    xb = x.astype(jnp.bfloat16).astype(jnp.float32)
    w1b = params["w1"].astype(jnp.bfloat16).astype(jnp.float32)
    w2b = params["w2"].astype(jnp.bfloat16).astype(jnp.float32)
    h_ref = jnp.maximum(xb @ w1b + params["b1"], 0.0)
    logits_ref = h_ref @ w2b + params["b2"]
    probs_ref = jax.nn.softmax(logits_ref, axis=1)

    assert probs.shape == (batch, num_classes)
    assert feats.shape == (batch, hidden)
    assert jnp.allclose(probs, probs_ref, atol=2e-2), "default path mismatch"
    assert jnp.allclose(feats, h_ref, atol=1e-3), "features path mismatch"
    assert jnp.allclose(probs2, probs_ref, atol=2e-2), "head path mismatch"
    assert jnp.allclose(jnp.sum(probs, axis=1), 1.0, atol=1e-2), "softmax not normalized"

    print("KERNEL_OK")
</pallas_src>

<mosaic_0001>
module attributes {stable_mosaic.version = 11 : i64} {
  func.func @_fused_mlp_softmax_kernel(%arg0: i32, %arg1: memref<8x128xbf16, #tpu.memory_space<vmem>>, %arg2: memref<128x128xbf16, #tpu.memory_space<vmem>>, %arg3: memref<1x128xf32, #tpu.memory_space<vmem>>, %arg4: memref<128x128xbf16, #tpu.memory_space<vmem>>, %arg5: memref<1x128xf32, #tpu.memory_space<vmem>>, %arg6: memref<8x128xf32, #tpu.memory_space<vmem>>) attributes {dimension_semantics = [#tpu.dimension_semantics<parallel>], iteration_bounds = array<i64: 1>, scalar_prefetch = 0 : i64, scratch_operands = 0 : i64, tpu.core_type = #tpu.core_type<tc>, window_params = [{transform_indices = @transform_0, window_bounds = array<i64: 8, 128>}, {pipeline_mode = #tpu.pipeline_mode<synchronous>, transform_indices = @transform_1, window_bounds = array<i64: 128, 128>}, {pipeline_mode = #tpu.pipeline_mode<synchronous>, transform_indices = @transform_2, window_bounds = array<i64: 1, 128>}, {pipeline_mode = #tpu.pipeline_mode<synchronous>, transform_indices = @transform_3, window_bounds = array<i64: 128, 128>}, {pipeline_mode = #tpu.pipeline_mode<synchronous>, transform_indices = @transform_4, window_bounds = array<i64: 1, 128>}, {transform_indices = @transform_5, window_bounds = array<i64: 8, 128>}]} {
    %c0 = arith.constant 0 : index
    %c0_0 = arith.constant 0 : index
    %0 = vector.load %arg1[%c0, %c0_0] : memref<8x128xbf16, #tpu.memory_space<vmem>>, vector<8x128xbf16>
    %c0_1 = arith.constant 0 : index
    %c0_2 = arith.constant 0 : index
    %1 = vector.load %arg2[%c0_1, %c0_2] : memref<128x128xbf16, #tpu.memory_space<vmem>>, vector<128x128xbf16>
    %cst = arith.constant dense<0.000000e+00> : vector<8x128xf32>
    %2 = tpu.matmul %0, %1, %cst {dimension_numbers = #tpu.dot_dimension_numbers<[1], [0], [0], [1], [0, 0, 1, 1], [], []>} : vector<8x128xbf16>, vector<128x128xbf16>, vector<8x128xf32> -> vector<8x128xf32>
    %c0_3 = arith.constant 0 : index
    %c0_4 = arith.constant 0 : index
    %3 = vector.load %arg3[%c0_3, %c0_4] : memref<1x128xf32, #tpu.memory_space<vmem>>, vector<1x128xf32>
    %4 = vector.broadcast %3 : vector<1x128xf32> to vector<8x128xf32>
    %5 = arith.addf %2, %4 : vector<8x128xf32>
    %cst_5 = arith.constant 0.000000e+00 : f32
    %6 = vector.broadcast %cst_5 : f32 to vector<8x128xf32>
    %7 = arith.maximumf %5, %6 : vector<8x128xf32>
    %8 = arith.truncf %7 : vector<8x128xf32> to vector<8x128xbf16>
    %c0_6 = arith.constant 0 : index
    %c0_7 = arith.constant 0 : index
    %9 = vector.load %arg4[%c0_6, %c0_7] : memref<128x128xbf16, #tpu.memory_space<vmem>>, vector<128x128xbf16>
    %cst_8 = arith.constant dense<0.000000e+00> : vector<8x128xf32>
    %10 = tpu.matmul %8, %9, %cst_8 {dimension_numbers = #tpu.dot_dimension_numbers<[1], [0], [0], [1], [0, 0, 1, 1], [], []>} : vector<8x128xbf16>, vector<128x128xbf16>, vector<8x128xf32> -> vector<8x128xf32>
    %c0_9 = arith.constant 0 : index
    %c0_10 = arith.constant 0 : index
    %11 = vector.load %arg5[%c0_9, %c0_10] : memref<1x128xf32, #tpu.memory_space<vmem>>, vector<1x128xf32>
    %12 = vector.broadcast %11 : vector<1x128xf32> to vector<8x128xf32>
    %13 = arith.addf %10, %12 : vector<8x128xf32>
    %cst_11 = arith.constant dense<0xFF800000> : vector<8xf32>
    %14 = vector.multi_reduction <maximumf>, %13, %cst_11 [1] : vector<8x128xf32> to vector<8xf32>
    %15 = vector.shape_cast %14 : vector<8xf32> to vector<8x1xf32>
    %16 = vector.broadcast %15 : vector<8x1xf32> to vector<8x128xf32>
    %17 = arith.subf %13, %16 : vector<8x128xf32>
    %18 = math.exp %17 : vector<8x128xf32>
    %cst_12 = arith.constant dense<0.000000e+00> : vector<8xf32>
    %19 = vector.multi_reduction <add>, %18, %cst_12 [1] : vector<8x128xf32> to vector<8xf32>
    %20 = vector.shape_cast %19 : vector<8xf32> to vector<8x1xf32>
    %21 = tpu.reciprocal %20 {approx = true} : vector<8x1xf32> -> vector<8x1xf32>
    %22 = vector.broadcast %21 : vector<8x1xf32> to vector<8x128xf32>
    %23 = arith.mulf %18, %22 : vector<8x128xf32>
    %c0_13 = arith.constant 0 : index
    %c0_14 = arith.constant 0 : index
    %24 = vector.load %arg6[%c0_13, %c0_14] : memref<8x128xf32, #tpu.memory_space<vmem>>, vector<8x128xf32>
    tpu.vector_store %arg6[%c0_13, %c0_14], %23 {strides = array<i32>} : memref<8x128xf32, #tpu.memory_space<vmem>>, vector<8x128xf32>,
    return
  }
  func.func @transform_0(%arg0: i32) -> (i32, i32) {
    %c0_i32 = arith.constant 0 : i32
    %c0_i32_0 = arith.constant 0 : i32
    return %arg0, %c0_i32 : i32, i32
  }
  func.func @transform_1(%arg0: i32) -> (i32, i32) {
    %c0_i32 = arith.constant 0 : i32
    %c0_i32_0 = arith.constant 0 : i32
    %c0_i32_1 = arith.constant 0 : i32
    return %c0_i32, %c0_i32_0 : i32, i32
  }
  func.func @transform_2(%arg0: i32) -> (i32, i32) {
    %c0_i32 = arith.constant 0 : i32
    %c0_i32_0 = arith.constant 0 : i32
    %c0_i32_1 = arith.constant 0 : i32
    return %c0_i32, %c0_i32_0 : i32, i32
  }
  func.func @transform_3(%arg0: i32) -> (i32, i32) {
    %c0_i32 = arith.constant 0 : i32
    %c0_i32_0 = arith.constant 0 : i32
    %c0_i32_1 = arith.constant 0 : i32
    return %c0_i32, %c0_i32_0 : i32, i32
  }
  func.func @transform_4(%arg0: i32) -> (i32, i32) {
    %c0_i32 = arith.constant 0 : i32
    %c0_i32_0 = arith.constant 0 : i32
    %c0_i32_1 = arith.constant 0 : i32
    return %c0_i32, %c0_i32_0 : i32, i32
  }
  func.func @transform_5(%arg0: i32) -> (i32, i32) {
    %c0_i32 = arith.constant 0 : i32
    %c0_i32_0 = arith.constant 0 : i32
    return %arg0, %c0_i32 : i32, i32
  }
}

</mosaic_0001>

<bundles_post_ra>
// kernel: mlp_head_model.1
= control target key start
LH: loop header
LB: loop body
LE: loop exit
PB: predicated region body
PF: predicated region fallthrough
CT: control target
= control target key end

     0   :  { %10 = vsyncpa [#allocation3], 0  ;;  %s694_s0 = inlined_call_operand.hbm [shape: bf16[8,128], index: 0, kind: input, shape index: {}]   ;;  %s695_s1 = inlined_call_operand.hbm [shape: bf16[128,128], index: 1, kind: input, shape index: {}]   ;;  %s696_s2 = inlined_call_operand.hbm [shape: f32[1,128], index: 2, kind: input, shape index: {}]   ;;  %s697_s3 = inlined_call_operand.hbm [shape: bf16[128,128], index: 3, kind: input, shape index: {}]   ;;  %s698_s4 = inlined_call_operand.hbm [shape: f32[1,128], index: 4, kind: input, shape index: {}]   ;;  %s699_s5 = inlined_call_operand.hbm [shape: f32[8,128], index: 5, kind: output, shape index: {}]  }
   0x1   :  { %11 = vsyncpa [#allocation6], 0 }
   0x2   :  { %12 = vsyncpa [#allocation9], 0 }
   0x3   :  { %13 = vsyncpa [#allocation4], 0  ;;  %s582_s18 = smov [#allocation5]   ;;  %s442_s22 = scalar_lea.hbm %s695_s1, 1024 }
   0x4   :  { %s29_s19 = sshll.u32 %s582_s18, 4  ;;  %p443_p0 = scmp.ne.s32.totalorder %s695_s1, %s442_s22  ;;  %s30_s19 = int_to_ptr.vmem [resolvable:$true] %s29_s19 }
   0x5   :  { %p446_p1 = scmp.lt.u32.totalorder %s442_s22, %s695_s1 }
   0x7   :  { %p448_p2 = pnand %p446_p1, %p443_p0 }
   0x9   :  { %451 = shalt.err (!%p448_p2)
}
   0xa   :  { %s452_s27 = scalar_lea.vmem %s30_s19, 1024  ;;  %p457_p4 = scmp.lt.s32.totalorder %s30_s19, %s30_s19 }
   0xb   :  { %p453_p3 = scmp.ne.s32.totalorder %s30_s19, %s452_s27  ;;  %p458_p5 = scmp.lt.s32.totalorder %s452_s27, %s452_s27 }
   0xd   :  { %p459_p6 = por %p458_p5, %p457_p4 }
   0xf   :  { %p460_p7 = pnand %p459_p6, %p453_p3 }
  0x11   :  { %463 = shalt.err (!%p460_p7)
}
  0x12   :  { %s583_s28 = smov 64   ;;  %s584_s29 = smov 4  }
  0x13   :  { %35 = dma.hbm_to_vmem [thread:$0]  %s695_s1, 1024, %s30_s19, [#allocation6], %s583_s28, %s583_s28, %s584_s29  }
  0x14   :  { %s585_s7 = smov [#allocation8]   ;;  %s586_s9 = smov [#allocation2]  }
  0x15   :  { %s51_s8 = sshll.u32 %s585_s7, 4  ;;  %s20_s10 = sshll.u32 %s586_s9, 4  ;;  %s52_s8 = int_to_ptr.vmem [resolvable:$true] %s51_s8  ;;  %s21_s10 = int_to_ptr.vmem [resolvable:$true] %s20_s10 }
  0x16   :  { %s464_s13 = scalar_lea.hbm %s697_s3, 1024 }
  0x17   :  { %p465_p8 = scmp.ne.s32.totalorder %s697_s3, %s464_s13  ;;  %p468_p9 = scmp.lt.u32.totalorder %s464_s13, %s697_s3 }
  0x19   :  { %p470_p10 = pnand %p468_p9, %p465_p8 }
  0x1b   :  { %473 = shalt.err (!%p470_p10)
}
  0x1c   :  { %s474_s1 = scalar_lea.vmem %s52_s8, 1024  ;;  %p479_p12 = scmp.lt.s32.totalorder %s52_s8, %s52_s8 }
  0x1d   :  { %p475_p11 = scmp.ne.s32.totalorder %s52_s8, %s474_s1  ;;  %p480_p13 = scmp.lt.s32.totalorder %s474_s1, %s474_s1 }
  0x1f   :  { %p481_p0 = por %p480_p13, %p479_p12 }
  0x21   :  { %p482_p1 = pnand %p481_p0, %p475_p11 }
  0x23   :  { %485 = shalt.err (!%p482_p1)
}
  0x24   :  { %57 = dma.hbm_to_vmem [thread:$0]  %s697_s3, 1024, %s52_s8, [#allocation9], %s583_s28, %s583_s28, %s584_s29  }
  0x25   :  { %s486_s22 = scalar_lea.hbm %s694_s0, 64 }
  0x26   :  { %p487_p2 = scmp.ne.s32.totalorder %s694_s0, %s486_s22  ;;  %p490_p3 = scmp.lt.u32.totalorder %s486_s22, %s694_s0 }
  0x28   :  { %p492_p4 = pnand %p490_p3, %p487_p2 }
  0x2a   :  { %495 = shalt.err (!%p492_p4)
}
  0x2b   :  { %s496_s27 = scalar_lea.vmem %s21_s10, 64  ;;  %p501_p6 = scmp.lt.s32.totalorder %s21_s10, %s21_s10 }
  0x2c   :  { %p497_p5 = scmp.ne.s32.totalorder %s21_s10, %s496_s27  ;;  %p502_p7 = scmp.lt.s32.totalorder %s496_s27, %s496_s27 }
  0x2e   :  { %p503_p8 = por %p502_p7, %p501_p6 }
  0x30   :  { %p504_p9 = pnand %p503_p8, %p497_p5 }
  0x32   :  { %507 = shalt.err (!%p504_p9)
}
  0x33   :  { %23 = dma.hbm_to_vmem [thread:$0]  %s694_s0, 64, %s21_s10, [#allocation3]  }
  0x34   :  { %s587_s29 = smov [#allocation7]   ;;  %s588_s6 = smov [#allocation10]  }
  0x35   :  { %s42_s30 = sshll.u32 %s587_s29, 4  ;;  %s64_s7 = sshll.u32 %s588_s6, 4  ;;  %s43_s30 = int_to_ptr.vmem [resolvable:$true] %s42_s30  ;;  %s65_s7 = int_to_ptr.vmem [resolvable:$true] %s64_s7 }
  0x36   :  { %s508_s11 = scalar_lea.hbm %s696_s2, 16 }
  0x37   :  { %p509_p10 = scmp.ne.s32.totalorder %s696_s2, %s508_s11  ;;  %p512_p11 = scmp.lt.u32.totalorder %s508_s11, %s696_s2 }
  0x39   :  { %p514_p12 = pnand %p512_p11, %p509_p10 }
  0x3b   :  { %517 = shalt.err (!%p514_p12)
}
  0x3c   :  { %s518_s0 = scalar_lea.vmem %s43_s30, 16  ;;  %s522_s10 = scalar_lea.vmem %s43_s30, 32 }
  0x3d   :  { %p519_p13 = scmp.ne.s32.totalorder %s43_s30, %s518_s0  ;;  %p523_p0 = scmp.lt.s32.totalorder %s43_s30, %s43_s30 }
  0x3e   :  { %p524_p1 = scmp.lt.s32.totalorder %s522_s10, %s518_s0 }
  0x40   :  { %p525_p2 = por %p524_p1, %p523_p0 }
  0x42   :  { %p526_p3 = pnand %p525_p2, %p519_p13 }
  0x44   :  { %529 = shalt.err (!%p526_p3)
}
  0x45   :  { %45 = dma.hbm_to_vmem [thread:$0]  %s696_s2, 16, %s43_s30, [#allocation6]  }
  0x46   :  { %s530_s19 = scalar_lea.hbm %s698_s4, 16 }
  0x47   :  { %p531_p4 = scmp.ne.s32.totalorder %s698_s4, %s530_s19  ;;  %p534_p5 = scmp.lt.u32.totalorder %s530_s19, %s698_s4 }
  0x49   :  { %p536_p6 = pnand %p534_p5, %p531_p4 }
  0x4b   :  { %539 = shalt.err (!%p536_p6)
}
  0x4c   :  { %s540_s24 = scalar_lea.vmem %s65_s7, 16  ;;  %s544_s25 = scalar_lea.vmem %s65_s7, 32 }
  0x4d   :  { %p541_p7 = scmp.ne.s32.totalorder %s65_s7, %s540_s24  ;;  %p545_p8 = scmp.lt.s32.totalorder %s65_s7, %s65_s7 }
  0x4e   :  { %p546_p9 = scmp.lt.s32.totalorder %s544_s25, %s540_s24 }
  0x50   :  { %p547_p10 = por %p546_p9, %p545_p8 }
  0x52   :  { %p548_p11 = pnand %p547_p10, %p541_p7 }
  0x54   :  { %551 = shalt.err (!%p548_p11)
}
  0x55   :  { %67 = dma.hbm_to_vmem [thread:$0]  %s698_s4, 16, %s65_s7, [#allocation9]  }
  0x56   :  { %574 = dma.done.wait [#allocation3], 64  }
  0x57   :  { %575 = vsyncadd [#allocation3], 4294967232 }
  0x58   :  { %576 = dma.done.wait [#allocation6], 1040  }
  0x59   :  { %577 = vsyncadd [#allocation6], 4294966256 }
  0x5a   :  { %578 = dma.done.wait [#allocation9], 1040  }
  0x5b   :  { %579 = vsyncadd [#allocation9], 4294966256  ;;  %v589_v0 = vmov 0.0   ;;  %vm590_vm0 = vmmov 0   ;;  %v422_v1 = vld [vmem:[#allocation5] sm:$0xff]   ;;  %v423_v2 = vld [vmem:[#allocation5 + $0x8] sm:$0xff]  }
  0x5c   :  { %372 = vmatprep.subr.bf16.mxu0 %v589_v0  ;;  %388 = vmatprep.mubr.msk.bf16.mxu0 %vm590_vm0, %v589_v0  ;;  %v424_v3 = vld [vmem:[#allocation5 + $0x10] sm:$0xff]   ;;  %v430_v4 = vld [vmem:[#allocation8] sm:$0xff]   ;;  %v425_v5 = vld [vmem:[#allocation5 + $0x18] sm:$0xff]   ;;  %s591_s4 = smov [#allocation11]  }
  0x5d   :  { %392 = vmatprep.subr.bf16.mxu1 %v589_v0  ;;  %408 = vmatprep.mubr.msk.bf16.mxu1 %vm590_vm0, %v589_v0  ;;  %v431_v6 = vld [vmem:[#allocation8 + $0x8] sm:$0xff]   ;;  %v426_v7 = vld [vmem:[#allocation5 + $0x20] sm:$0xff]   ;;  %v432_v8 = vld [vmem:[#allocation8 + $0x10] sm:$0xff]   ;;  %s325_s27 = sshll.u32 %s591_s4, 4  ;;  %s326_s27 = int_to_ptr.vmem [resolvable:$true] %s325_s27 }
  0x5e   :  { %373 = vmatpush3.bf16.msra.mxu0 %v422_v1  ;;  %393 = vmatpush3.bf16.msra.mxu1 %v430_v4  ;;  %v427_v9 = vld [vmem:[#allocation5 + $0x28] sm:$0xff]   ;;  %v433_v10 = vld [vmem:[#allocation8 + $0x18] sm:$0xff]   ;;  %v428_v11 = vld [vmem:[#allocation5 + $0x30] sm:$0xff]   ;;  %s552_s3 = scalar_lea.vmem %s326_s27, 128  ;;  %p557_p13 = scmp.lt.s32.totalorder %s326_s27, %s326_s27 }
  0x5f   :  { %374 = vmatprep.subr.bf16.mxu0 %v589_v0  ;;  %394 = vmatprep.subr.bf16.mxu1 %v589_v0  ;;  %v434_v12 = vld [vmem:[#allocation8 + $0x20] sm:$0xff]   ;;  %v429_v13 = vld [vmem:[#allocation5 + $0x38] sm:$0xff]   ;;  %v435_v14 = vld [vmem:[#allocation8 + $0x28] sm:$0xff]   ;;  %p553_p12 = scmp.ne.s32.totalorder %s326_s27, %s552_s3  ;;  %p558_p0 = scmp.lt.s32.totalorder %s552_s3, %s552_s3 }
  0x60   :  { %v84_v15 = vld [vmem:[#allocation2] sm:$0xf]  ;;  %v436_v16 = vld [vmem:[#allocation8 + $0x30] sm:$0xff]   ;;  %v336_v18 = vld [vmem:[#allocation7] ss:$0 sm:$0xff] }
  0x61   :  { %v437_v17 = vld [vmem:[#allocation8 + $0x38] sm:$0xff]   ;;  %v345_v26 = vld [vmem:[#allocation10] ss:$0 sm:$0xff]  ;;  %p559_p1 = por %p558_p0, %p557_p13 }
  0x62   :  { %375 = vmatpush3.bf16.msra.mxu0 %v423_v2  ;;  %395 = vmatpush3.bf16.msra.mxu1 %v431_v6 }
  0x63   :  { %376 = vmatprep.subr.bf16.mxu0 %v589_v0  ;;  %396 = vmatprep.subr.bf16.mxu1 %v589_v0  ;;  %p560_p2 = pnand %p559_p1, %p553_p12 }
  0x66   :  { %377 = vmatpush3.bf16.msra.mxu0 %v424_v3  ;;  %397 = vmatpush3.bf16.msra.mxu1 %v432_v8 }
  0x67   :  { %378 = vmatprep.subr.bf16.mxu0 %v589_v0  ;;  %398 = vmatprep.subr.bf16.mxu1 %v589_v0 }
  0x6a   :  { %379 = vmatpush3.bf16.msra.mxu0 %v425_v5  ;;  %399 = vmatpush3.bf16.msra.mxu1 %v433_v10 }
  0x6b   :  { %380 = vmatprep.subr.bf16.mxu0 %v589_v0  ;;  %400 = vmatprep.subr.bf16.mxu1 %v589_v0 }
  0x6e   :  { %381 = vmatpush3.bf16.msra.mxu0 %v426_v7  ;;  %401 = vmatpush3.bf16.msra.mxu1 %v434_v12 }
  0x6f   :  { %382 = vmatprep.subr.bf16.mxu0 %v589_v0  ;;  %402 = vmatprep.subr.bf16.mxu1 %v589_v0 }
  0x72   :  { %383 = vmatpush3.bf16.msra.mxu0 %v427_v9  ;;  %403 = vmatpush3.bf16.msra.mxu1 %v435_v14 }
  0x73   :  { %384 = vmatprep.subr.bf16.mxu0 %v589_v0  ;;  %404 = vmatprep.subr.bf16.mxu1 %v589_v0 }
  0x76   :  { %385 = vmatpush3.bf16.msra.mxu0 %v428_v11  ;;  %405 = vmatpush3.bf16.msra.mxu1 %v436_v16 }
  0x77   :  { %386 = vmatprep.subr.bf16.mxu0 %v589_v0  ;;  %406 = vmatprep.subr.bf16.mxu1 %v589_v0 }
  0x7a   :  { %387 = vmatpush3.bf16.msra.mxu0 %v429_v13  ;;  %407 = vmatpush3.bf16.msra.mxu1 %v437_v17 }
  0x7d   :  { %389 = vmatmul.mubr.bf16.vlgmr.msra.gmra.mrb[0].mxu0 %v84_v15 }
 0x150   :  { %v190_v19 = vpop.f32.mrb[0].mxu0 }
 0x151   :  { %v191_v20 = vadd.f32 %v336_v18, %v190_v19  ;;  %v390_v21 = vpop.f32.mrb[1].mxu0 }
 0x152   :  { %v193_v22 = vpop.f32.mrb[2].mxu0 }
 0x153   :  { %v196_v23 = vmax.f32 %v191_v20, 0.0  ;;  %v391_v24 = vpop.f32.mrb[3].mxu0 }
 0x155   :  { %v197_v25 = vpack.c.bf16 %v196_v23, %v196_v23 }
 0x157   :  { %409 = vmatmul.mubr.bf16.vlgmr.msra.gmra.mrb[0].mxu1 %v197_v25 }
 0x22a   :  { %v303_v27 = vpop.f32.mrb[0].mxu1 }
 0x22b   :  { %v304_v28 = vadd.f32 %v345_v26, %v303_v27  ;;  %v410_v29 = vpop.f32.mrb[1].mxu1 }
 0x22c   :  { %v306_v30 = vpop.f32.mrb[2].mxu1 }
 0x22d   :  { %309 = vmax.xlane.f32.xlu0 %v304_v28  ;;  %v411_v31 = vpop.f32.mrb[3].mxu1 }
 0x2ba   :  { %v310_v32 = vpop.xlane.xlu0 %309 }
 0x2bb   :  { %v311_v33 = vsub.f32 %v304_v28, %v310_v32 }
 0x2bd   :  { %v312_v34 = vmul.f32 1.442695, %v311_v33 }
 0x2bf   :  { %438 = vpow2.f32 %v312_v34 }
 0x2c9   :  { %v439_v35 = vpop.eup %438 }
 0x2ca   :  { %314 = vadd.xlane.f32.xlu0 %v439_v35 }
 0x357   :  { %v315_v36 = vpop.xlane.xlu0 %314 }
 0x358   :  { %440 = vrcp.f32 %v315_v36 }
 0x362   :  { %v441_v37 = vpop.eup %440 }
 0x363   :  { %v317_v38 = vmul.f32 %v441_v37, %v439_v35 }
 0x365   :  { %318 = vst [vmem:[#allocation11] sm:$0xff] %v317_v38 }
 0x366   :  { %563 = shalt.err (!%p560_p2)
}
 0x367   :  { %s564_s30 = scalar_lea.hbm %s699_s5, 128 }
 0x368   :  { %p565_p3 = scmp.ne.s32.totalorder %s699_s5, %s564_s30  ;;  %p568_p4 = scmp.lt.u32.totalorder %s564_s30, %s699_s5 }
 0x36a   :  { %p570_p5 = pnand %p568_p4, %p565_p3 }
 0x36c   :  { %573 = shalt.err (!%p570_p5)
}
 0x36d   :  { %328 = dma.vmem_to_hbm [thread:$0]  %s326_s27, 128, %s699_s5, [#allocation4]  }
 0x36e   :  { %580 = dma.done.wait [#allocation4], 128  }
 0x36f   :  { %581 = vsyncadd [#allocation4], 4294967168 }
 0x370   :  { %332 = vsyncpa [#allocation3], 1 }
 0x371   :  { %333 = vsyncpa [#allocation6], 1 }
 0x372   :  { %334 = vsyncpa [#allocation9], 1 }
 0x373   :  { %335 = vsyncpa [#allocation4], 1 }

</bundles_post_ra>
